<compile_context>
chip_gen: v7x
topology: tpu7x:2x2x1
jax: 0.10.0
libtpu: 0.0.40
codegen_flags: <defaults>
</compile_context>

<pallas_src>
import jax
import jax.numpy as jnp
from jax.experimental import pallas as pl
from jax.experimental.pallas import tpu as pltpu

# XLM-RoBERTa special-token conventions.
BOS_ID = 0   # <s>
PAD_ID = 1   # <pad>
EOS_ID = 2   # </s>


def _round_up(x: int, m: int) -> int:
    return ((x + m - 1) // m) * m


def _largest_dividing_tile(b: int, cap: int) -> int:
    """Largest multiple of 8 that divides b (b % 8 == 0) and is <= cap."""
    best = 8
    t = 8
    limit = min(b, cap)
    while t <= limit:
        if b % t == 0:
            best = t
        t += 8
    return best


def _make_kernel(pre_shifted: bool):
    """Build the per-tile kernel.

    pre_shifted=False: raw_ref holds unshifted content ids; shift in-kernel
                       with pltpu.roll (fast path, no wrapper pad pass).
    pre_shifted=True : raw_ref column j already holds content token j-1
                       (shift folded into the wrapper padding copy).
    """
    def kernel(eff_ref, raw_ref, out_ref):
        # eff_ref : [TB, 1]  int32 -- content length, pre-clamped to [0, L-2]
        # raw_ref : [TB, Lp] int32 -- content token ids
        # out_ref : [TB, Lp] int32 -- [BOS, content, EOS, PAD...]
        raw = raw_ref[...]
        eff = eff_ref[...]                                       # [TB, 1]
        tb, lp = raw.shape
        col = jax.lax.broadcasted_iota(jnp.int32, (tb, lp), 1)   # column idx

        # Column j (j >= 1) must hold content token j-1.
        if pre_shifted:
            shifted = raw
        else:
            shifted = pltpu.roll(raw, shift=1, axis=1)

        # Sequential overwrites; BOS must be LAST (it clobbers the roll wrap
        # / the zero at column 0).
        out = jnp.where(col > eff, jnp.int32(PAD_ID), shifted)       # PAD tail
        out = jnp.where(col == eff + 1, jnp.int32(EOS_ID), out)      # EOS
        out = jnp.where(col == 0, jnp.int32(BOS_ID), out)            # BOS
        out_ref[...] = out

    return kernel


def hf_transform_forward(raw_ids: jax.Array, lengths: jax.Array,
                         max_seq_len: int, *, tile_b: int | None = None):
    """Pallas equivalent of HFTransform.forward on pre-segmented token ids.

    raw_ids : [B, max_seq_len] int content token ids (already segmented)
    lengths : [B, 1] (or [B]) int true content length per row (may exceed
              max_seq_len; truncated to max_seq_len - 2 content tokens)
    returns : [B, max_seq_len] int32 input_ids (BOS + content + EOS + PAD)
    """
    B, L = raw_ids.shape
    assert L == max_seq_len
    assert max_seq_len >= 2, "need room for BOS and EOS"
    if lengths.ndim == 1:
        lengths = lengths[:, None]

    # Content length after truncation, clamped into [0, L-2].
    eff = jnp.clip(lengths.astype(jnp.int32), 0, L - 2)          # [B, 1]

    # ~2 MiB per raw/out block: >=1 MiB blocks reach ~85-86% of HBM roofline;
    # double-buffered in+out is ~4x block ~= 8 MiB, under v5e's 16 MiB scoped
    # default and far under v7x's 64 MiB physical VMEM.
    BLOCK_BYTES = 2 * 1024 * 1024

    l_aligned = (L % 128 == 0)
    b_aligned = (B % 8 == 0)
    l_eff = L if l_aligned else max(128, _round_up(L, 128))

    cap = max(8, (BLOCK_BYTES // (l_eff * 4)) // 8 * 8)
    if tile_b is not None:
        cap = max(8, _round_up(tile_b, 8))

    fast = l_aligned and b_aligned
    if fast:
        # Fast path: no pad pass, no output slice -- the kernel is the only
        # read+write pass over the data.
        tile = _largest_dividing_tile(B, cap)
        if B // tile < 2 and tile > 8:
            # Keep grid >= 2 so multi-TC chips (v7x) can shard batch tiles
            # across cores; only split if blocks don't collapse (>= 1/4 size).
            cand = _largest_dividing_tile(B, tile // 2)
            if cand * 4 >= tile:
                tile = cand
        b_eff = B
        raw_in = raw_ids.astype(jnp.int32)
        eff_in = eff
        pre_shifted = False
    else:
        # Padded path: lane-dense seq axis, 8-aligned batch. The pad copy
        # already touches every element, so fold the 1-lane right shift into
        # it (content goes into columns 1..L-1) and skip the in-kernel roll.
        tile = min(cap, _round_up(B, 8))
        if _round_up(B, tile) // tile < 2 and tile > 8:
            tile = max(8, _round_up(tile // 2, 8))
        b_eff = _round_up(B, tile)
        raw_in = jnp.zeros((b_eff, l_eff), jnp.int32).at[:B, 1:L].set(
            raw_ids[:, : L - 1].astype(jnp.int32))
        eff_in = jnp.zeros((b_eff, 1), jnp.int32).at[:B].set(eff)
        pre_shifted = True

    grid = b_eff // tile
    block_bytes = tile * l_eff * 4
    bytes_accessed = 2 * b_eff * l_eff * 4 + b_eff * 4

    out = pl.pallas_call(
        _make_kernel(pre_shifted),
        out_shape=jax.ShapeDtypeStruct((b_eff, l_eff), jnp.int32),
        grid=(grid,),
        in_specs=[
            pl.BlockSpec((tile, 1), lambda i: (i, 0)),
            pl.BlockSpec((tile, l_eff), lambda i: (i, 0)),
        ],
        out_specs=pl.BlockSpec((tile, l_eff), lambda i: (i, 0)),
        compiler_params=pltpu.CompilerParams(
            dimension_semantics=("parallel",),
            # ~4x block (double-buffered in + out) + headroom; always <= the
            # smallest physical VMEM (v7x 64 MiB) and >= v5e's 16 MiB default.
            vmem_limit_bytes=max(16 * 1024 * 1024,
                                 4 * block_bytes + 4 * 1024 * 1024),
        ),
        cost_estimate=pl.CostEstimate(
            flops=0, transcendentals=0, bytes_accessed=bytes_accessed),
    )(eff_in, raw_in)

    if fast:
        return out
    return out[:B, :L]


def _reference(raw_ids, lengths, max_seq_len):
    """Pure-JAX reference of the same semantics."""
    B, L = raw_ids.shape
    if lengths.ndim == 1:
        lengths = lengths[:, None]
    eff = jnp.clip(lengths.astype(jnp.int32), 0, L - 2)          # [B, 1]
    col = jnp.arange(L, dtype=jnp.int32)[None, :]
    shifted = jnp.concatenate([raw_ids[:, -1:], raw_ids[:, :-1]], axis=1)
    out = jnp.where(col > eff, PAD_ID, shifted)
    out = jnp.where(col == eff + 1, EOS_ID, out)
    out = jnp.where(col == 0, BOS_ID, out)
    return out.astype(jnp.int32)


if __name__ == "__main__":
    # TODO(synk): the real SentencePiece string->subword segmentation of
    # xlm-roberta-base has no Pallas equivalent; synthetic content ids stand
    # in for the tokenizer vocabulary lookup.
    key = jax.random.PRNGKey(0)
    k_ids, k_len, k_ids2, k_len2 = jax.random.split(key, 4)

    # --- Case 1: aligned shapes (module default L=256) -> fast path -------
    max_seq_len = 256
    batch = 16
    raw_ids = jax.random.randint(
        k_ids, (batch, max_seq_len), 4, 250000, dtype=jnp.int32)
    lengths = jax.random.randint(k_len, (batch, 1), 0, 400, dtype=jnp.int32)
    lengths = lengths.at[0, 0].set(400)   # > max_seq_len -> truncated
    lengths = lengths.at[1, 0].set(0)     # empty -> [BOS, EOS, PAD...]

    ref = _reference(raw_ids, lengths, max_seq_len)
    out = hf_transform_forward(raw_ids, lengths, max_seq_len)
    out = jax.block_until_ready(out)
    assert out.shape == (batch, max_seq_len) and out.dtype == jnp.int32
    assert bool(jnp.all(out == ref)), "fast-path output mismatch vs reference"

    # --- Case 2: unaligned shapes -> padded path (shift folded into pad) --
    max_seq_len2 = 200
    batch2 = 10
    raw_ids2 = jax.random.randint(
        k_ids2, (batch2, max_seq_len2), 4, 250000, dtype=jnp.int32)
    lengths2 = jax.random.randint(k_len2, (batch2, 1), 0, 300, dtype=jnp.int32)
    lengths2 = lengths2.at[0, 0].set(max_seq_len2 - 2)   # exactly full
    lengths2 = lengths2.at[1, 0].set(0)

    ref2 = _reference(raw_ids2, lengths2, max_seq_len2)
    out2 = hf_transform_forward(raw_ids2, lengths2, max_seq_len2)
    out2 = jax.block_until_ready(out2)
    assert out2.shape == (batch2, max_seq_len2) and out2.dtype == jnp.int32
    assert bool(jnp.all(out2 == ref2)), "padded-path output mismatch vs reference"

    # forward() returns ragged (unpadded) id lists; strip padding per row (glue).
    eff = jnp.clip(lengths[:, 0], 0, max_seq_len - 2)
    input_ids = [out[b, : int(eff[b]) + 2].tolist() for b in range(batch)]
    assert all(ids[0] == BOS_ID and ids[-1] == EOS_ID for ids in input_ids)

    print("KERNEL_OK")
</pallas_src>

<mosaic_0001>
module attributes {stable_mosaic.version = 11 : i64} {
  func.func @kernel(%arg0: i32, %arg1: memref<8x1xi32, #tpu.memory_space<vmem>>, %arg2: memref<8x256xi32, #tpu.memory_space<vmem>>, %arg3: memref<8x256xi32, #tpu.memory_space<vmem>>) attributes {dimension_semantics = [#tpu.dimension_semantics<parallel>], iteration_bounds = array<i64: 2>, scalar_prefetch = 0 : i64, scratch_operands = 0 : i64, tpu.core_type = #tpu.core_type<tc>, window_params = [{transform_indices = @transform_0, window_bounds = array<i64: 8, 1>}, {transform_indices = @transform_1, window_bounds = array<i64: 8, 256>}, {transform_indices = @transform_2, window_bounds = array<i64: 8, 256>}]} {
    %c0 = arith.constant 0 : index
    %c0_0 = arith.constant 0 : index
    %0 = vector.load %arg2[%c0, %c0_0] : memref<8x256xi32, #tpu.memory_space<vmem>>, vector<8x256xi32>
    %c0_1 = arith.constant 0 : index
    %c0_2 = arith.constant 0 : index
    %1 = vector.load %arg1[%c0_1, %c0_2] : memref<8x1xi32, #tpu.memory_space<vmem>>, vector<8x1xi32>
    %2 = tpu.iota {dimensions = array<i32: 1>} : vector<8x256xi32>
    %c1_i32 = arith.constant 1 : i32
    %3 = tpu.dynamic_rotate %0 by %c1_i32 dim 1 : vector<8x256xi32>, i32 -> vector<8x256xi32>
    %4 = vector.broadcast %1 : vector<8x1xi32> to vector<8x256xi32>
    %5 = arith.cmpi sgt, %2, %4 : vector<8x256xi32>
    %c1_i32_3 = arith.constant 1 : i32
    %6 = vector.broadcast %c1_i32_3 : i32 to vector<8x256xi32>
    %7 = arith.select %5, %6, %3 : vector<8x256xi1>, vector<8x256xi32>
    %c1_i32_4 = arith.constant 1 : i32
    %8 = vector.broadcast %c1_i32_4 : i32 to vector<8x1xi32>
    %9 = arith.addi %1, %8 : vector<8x1xi32>
    %10 = vector.broadcast %9 : vector<8x1xi32> to vector<8x256xi32>
    %11 = arith.cmpi eq, %2, %10 : vector<8x256xi32>
    %c2_i32 = arith.constant 2 : i32
    %12 = vector.broadcast %c2_i32 : i32 to vector<8x256xi32>
    %13 = arith.select %11, %12, %7 : vector<8x256xi1>, vector<8x256xi32>
    %c0_i32 = arith.constant 0 : i32
    %14 = vector.broadcast %c0_i32 : i32 to vector<8x256xi32>
    %15 = arith.cmpi eq, %2, %14 : vector<8x256xi32>
    %c0_i32_5 = arith.constant 0 : i32
    %16 = vector.broadcast %c0_i32_5 : i32 to vector<8x256xi32>
    %17 = arith.select %15, %16, %13 : vector<8x256xi1>, vector<8x256xi32>
    %c0_6 = arith.constant 0 : index
    %c0_7 = arith.constant 0 : index
    %18 = vector.load %arg3[%c0_6, %c0_7] : memref<8x256xi32, #tpu.memory_space<vmem>>, vector<8x256xi32>
    tpu.vector_store %arg3[%c0_6, %c0_7], %17 {strides = array<i32>} : memref<8x256xi32, #tpu.memory_space<vmem>>, vector<8x256xi32>,
    return
  }
  func.func @transform_0(%arg0: i32) -> (i32, i32) {
    %c0_i32 = arith.constant 0 : i32
    %c0_i32_0 = arith.constant 0 : i32
    return %arg0, %c0_i32 : i32, i32
  }
  func.func @transform_1(%arg0: i32) -> (i32, i32) {
    %c0_i32 = arith.constant 0 : i32
    %c0_i32_0 = arith.constant 0 : i32
    return %arg0, %c0_i32 : i32, i32
  }
  func.func @transform_2(%arg0: i32) -> (i32, i32) {
    %c0_i32 = arith.constant 0 : i32
    %c0_i32_0 = arith.constant 0 : i32
    return %arg0, %c0_i32 : i32, i32
  }
}

</mosaic_0001>

<bundles_post_ra>
// kernel: tpu_custom_call.1
= control target key start
LH: loop header
LB: loop body
LE: loop exit
PB: predicated region body
PF: predicated region fallthrough
CT: control target
= control target key end

     0   :  { %7 = vsyncpa [#allocation3], 0  ;;  %s661_s0 = inlined_call_operand.vmem [shape: s32[16,1], index: 0, kind: input, shape index: {}]   ;;  %s662_s1 = inlined_call_operand.hbm [shape: s32[16,256], index: 1, kind: input, shape index: {}]   ;;  %s663_s2 = inlined_call_operand.hbm [shape: s32[16,256], index: 2, kind: output, shape index: {}]  }
   0x1   :  { %9 = vsyncpa [#allocation3 + $0x1], 0 }
   0x2   :  { %10 = vsyncpa [#allocation4], 0 }
   0x3   :  { %12 = vsyncpa [#allocation4 + $0x1], 0  ;;  %s491_s9 = smov 0   ;;  %s493_s10 = smov 0  }
   0x4   :  { %s495_s11 = smov 0   ;;  %s497_s12 = smov 0  }
   0x5 LB: > { %s512_s13 = sadd.s32 4294967295, %s470_s12   ;;  %s308_s14 = sadd.s32 4294967294, %s470_s12   ;;  %s470_s12 = sphi %s497_s12, %s678_s12   ;;  %s466_s11 = sphi %s495_s11, %s677_s11   ;;  %s462_s10 = sphi %s493_s10, %s676_s10   ;;  %s458_s9 = sphi %s491_s9, %s675_s9  }
   0x6   : > { %s516_s15 = sadd.s32 1, %s470_s12   ;;  %s51_s16 = sadd.s32 1, %s466_s11 }
   0x7   : > { %s48_s17 = ssub.s32 %s470_s12, %s516_s15  ;;  %p58_p0 = scmp.ne.s32.totalorder %s466_s11, %s462_s10 }
   0x8   : > { %p49_p1 = scmp.eq.s32.totalorder %s48_s17, 0  ;;  %p59_p2 = scmp.eq.s32.totalorder %s470_s12, 0 }
   0x9   : > { %p64_p3 = scmp.ne.s32.totalorder %s462_s10, %s458_s9  ;;  %p65_p4 = scmp.eq.s32.totalorder %s512_s13, 0 }
   0xa   : > { %s528_s18 = scalar_select %p49_p1, %s466_s11, %s51_s16  }
   0xb   : > { %p530_p5 = por %p59_p2, %p58_p0  ;;  %p534_p6 = por %p65_p4, %p64_p3 }
   0xc   : > { %p88_p7 = scmp.eq.s32.totalorder %s512_s13, 1  ;;  %p94_p8 = scmp.eq.s32.totalorder %s308_s14, 1 }
   0xd   : > { %p337_p10 = scmp.lt.s32.totalorder %s470_s12, 2  ;;  %s121_s23 = sand.u32 1, %s466_s11  }
   0xe   : > { %p541_p11 = por %p88_p7, %p58_p0  ;;  %p545_p12 = por %p94_p8, %p64_p3 }
   0xf   : > { %s323_s24 = sshll.u32 %s470_s12, 8  ;;  %s311_s25 = sshll.u32 %s121_s23, 4 }
  0x10   : > { %s667_s21 = scalar_select %p541_p11, 1, 0 }
  0x11   : > { %s668_s22 = scalar_select %p545_p12, 1, 0 }
  0x12   : > { %s554_s28 = scalar_lea.hbm %s662_s1, %s323_s24  ;;  %s125_s29 = scalar_lea.vmem [#allocation2], %s311_s25 }
  0x13   : > { %s133_s30 = sshll.u32 %s125_s29, 4  ;;  %p558_p13 = pnand %p337_p10, %p530_p5  ;;  %s562_s30 = int_to_ptr.vmem [resolvable:$true] %s133_s30 }
  0x14   : > { %s122_s4 = scalar_lea.sflag [#allocation3], %s121_s23  ;;  %s374_s5 = scalar_lea.hbm %s554_s28, 256 }
  0x15   : > { %p375_p2 = scmp.ne.s32.totalorder %s554_s28, %s374_s5  ;;  %p376_p3 = pneg %p558_p13 }
  0x16   : > { %s379_s8 = scalar_lea.hbm %s662_s1, 512  ;;  %p380_p5 = scmp.lt.u32.totalorder %s554_s28, %s662_s1 }
  0x17   : > { %p377_p4 = pnand %p376_p3, %p375_p2  ;;  %p381_p8 = scmp.lt.u32.totalorder %s379_s8, %s374_s5 }
  0x18   : > { %p383_p9 = scmp.lt.u32.totalorder %s374_s5, %s554_s28 }
  0x19   : > { %p378_p7 = pneg %p377_p4  ;;  %p382_p10 = por %p381_p8, %p380_p5 }
  0x1b   : > { %p384_p0 = por %p383_p9, %p382_p10 }
  0x1d   : > { %p385_p1 = pnand %p384_p0, %p378_p7 }
  0x1f   : > { %388 = shalt.err (!%p385_p1)
}
  0x20   : > { %s389_s17 = scalar_lea.vmem %s562_s30, 256  ;;  %s472_s19 = smov [#allocation2]  }
  0x21   : > { %p390_p2 = scmp.ne.s32.totalorder %s562_s30, %s389_s17  ;;  %s394_s23 = sshll.u32 %s472_s19, 4  ;;  %s395_s23 = int_to_ptr.vmem [resolvable:$false] %s394_s23 }
  0x22   : > { %s396_s24 = scalar_lea.vmem %s395_s23, 512  ;;  %p397_p11 = scmp.lt.s32.totalorder %s562_s30, %s395_s23 }
  0x23   : > { %p392_p4 = pnand %p390_p2, %p376_p3  ;;  %p398_p5 = scmp.lt.s32.totalorder %s396_s24, %s389_s17 }
  0x25   : > { %p393_p12 = pneg %p392_p4  ;;  %p399_p8 = por %p398_p5, %p397_p11 }
  0x27   : > { %p400_p9 = pnand %p399_p8, %p393_p12 }
  0x29   : > { %403 = shalt.err (!%p400_p9)
}
  0x2a   : > { %332 = dma.hbm_to_vmem [thread:$0]  (!%p558_p13), %s554_s28, 256, %s562_s30, %s122_s4  }
  0x2b   : > { %p670_p0 = scmp.lt.s32.totalorder %s470_s12, 3  ;;  %p671_p1 = scmp.ge.s32.totalorder %s470_s12, 1 }
  0x2d   : > { %p139_p3 = pnand %p671_p1, %p670_p0 }
  0x2e   : > { %s596_s25 = sand.u32 (!%p139_p3), 1, %s462_s10  }
  0x2f   : > { %142 = sbr.rel (%p139_p3) target bundleno = 211 (0xd3), region = 28  ;;  %s315_s26 = sshll.u32 (!%p139_p3), %s596_s25, 4 }
  0x30   : > { %s145_s27 = scalar_lea.sflag (!%p139_p3), [#allocation3], %s596_s25  ;;  %s148_s29 = scalar_lea.vmem (!%p139_p3), [#allocation2], %s315_s26 }
  0x36   : > { %449 = dma.done.wait (%p534_p6), %s145_s27, 256  }
  0x37   : > { %451 = vsyncadd (%p534_p6), %s145_s27, 4294967040  ;;  %p173_p11 = scmp.lt.s32.totalorder %s512_s13, 1  ;;  %v473_v0 = vmov 0   ;;  %v177_v2 = vld [vmem:[%s148_s29] sm:$0xff]  ;;  %s474_s6 = smov 1   ;;  %v178_v4 = vld [vmem:[%s148_s29 + $0x8] sm:$0xff]  ;;  %v180_v5 = vlaneseq }
  0x38   : > { %373 = vset.pattern.permute.xlu0 %v473_v0  ;;  %183 = vrot.lane.b32.xlu1 %v177_v2, %s474_s6  ;;  %s172_s20 = scalar_lea.vmem [#allocation5], %s315_s26  ;;  %s324_s8 = sshll.u32 %s512_s13, 8 }
  0x39   : > { %s174_s28 = scalar_select %p173_p11, %s512_s13, 1  ;;  %v181_v7 = vand.u32 127, %v180_v5 }
  0x3a   : > { %s226_s7 = sshll.u32 %s172_s20, 4  ;;  %s617_s17 = scalar_lea.hbm %s663_s2, %s324_s8  ;;  %s619_s7 = int_to_ptr.vmem [resolvable:$true] %s226_s7 }
  0x3b   : > { %s317_s30 = sshll.u32 %s174_s28, 3  ;;  %v182_v8 = vadd.s32 128, %v181_v7  ;;  %vm187_vm0 = vcmp.lt.s32.totalorder %v181_v7, 1  ;;  %vm205_vm3 = vcmp.eq.s32.totalorder %v181_v7, 0  ;;  %s212_s13 = scalar_lea.sflag [#allocation4], %s596_s25 }
  0x3c   : > { %s176_s5 = scalar_lea.vmem %s661_s0, %s317_s30  ;;  %185 = vrot.lane.b32.xlu1 %v178_v4, %s474_s6  ;;  %s404_s19 = scalar_lea.vmem %s619_s7, 256 }
  0x3d   : > { %v179_v1 = vld [vmem:[%s176_s5] sm:$0xff]  ;;  %p405_p6 = scmp.ne.s32.totalorder %s619_s7, %s404_s19  ;;  %p672_p12 = scmp.ne.s32.totalorder %s667_s21, 0 }
  0x3e   : > { %191 = vperm.xlu0 %373, %v179_v1   ;;  %v197_v3 = vadd.s32 1, %v179_v1  ;;  %s475_s23 = smov [#allocation5]  }
  0x3f   : > { %p406_p13 = pnand %p405_p6, %p672_p12  ;;  %s408_s24 = sshll.u32 %s475_s23, 4  ;;  %s409_s24 = int_to_ptr.vmem [resolvable:$false] %s408_s24 }
  0x40   : > { %s410_s26 = scalar_lea.vmem %s409_s24, 512  ;;  %p411_p10 = scmp.lt.s32.totalorder %s619_s7, %s409_s24 }
  0x41   : > { %p407_p7 = pneg %p406_p13  ;;  %p412_p2 = scmp.lt.s32.totalorder %s410_s26, %s404_s19 }
  0x42   : > { %199 = vperm.xlu0 %373, %v197_v3  }
  0x43   : > { %p413_p4 = por %p412_p2, %p411_p10 }
  0x45   : > { %p414_p5 = pnand %p413_p4, %p407_p7 }
  0xaa   : > { %v184_v6 = vpop.permute.xlu1 %183 }
  0xae   : > { %v186_v9 = vpop.permute.xlu1 %185 }
  0xaf   : > { %v188_v11 = vsel %vm187_vm0, %v184_v6, %v186_v9  ;;  %v189_v12 = vsel %vm187_vm0, %v186_v9, %v184_v6 }
  0xbd   : > { %v192_v10 = vpop.permute.xlu0 %191 }
  0xbe   : > { %vm193_vm1 = vcmp.gt.s32.totalorder %v181_v7, %v192_v10  ;;  %vm194_vm2 = vcmp.gt.s32.totalorder %v182_v8, %v192_v10 }
  0xbf   : > { %v195_v14 = vsel %vm193_vm1, 1, %v189_v12  ;;  %v196_v15 = vsel %vm194_vm2, 1, %v188_v11 }
  0xc1   : > { %v200_v13 = vpop.permute.xlu0 %199 }
  0xc2   : > { %vm201_vm4 = vcmp.eq.s32.totalorder %v181_v7, %v200_v13  ;;  %vm202_vm5 = vcmp.eq.s32.totalorder %v182_v8, %v200_v13 }
  0xc3   : > { %v203_v16 = vsel %vm201_vm4, 2, %v195_v14  ;;  %v204_v17 = vsel %vm202_vm5, 2, %v196_v15 }
  0xc4   : > { %v207_v18 = vsel %vm205_vm3, 0, %v203_v16  ;;  %210 = vst [vmem:[%s172_s20 + $0x8] sm:$0xff] %v204_v17 }
  0xc5   : > { %209 = vst [vmem:[%s172_s20] sm:$0xff] %v207_v18 }
  0xc6   : > { %417 = shalt.err (!%p414_p5)
}
  0xc7   : > { %s418_s25 = scalar_lea.hbm %s617_s17, 256  ;;  %s422_s28 = scalar_lea.hbm %s663_s2, 512 }
  0xc8   : > { %p419_p8 = scmp.ne.s32.totalorder %s617_s17, %s418_s25  ;;  %p423_p1 = scmp.lt.u32.totalorder %s617_s17, %s663_s2 }
  0xc9   : > { %p424_p3 = scmp.lt.u32.totalorder %s422_s28, %s418_s25  ;;  %p426_p6 = scmp.lt.u32.totalorder %s418_s25, %s617_s17 }
  0xca   : > { %p420_p9 = pnand %p419_p8, %p672_p12 }
  0xcb   : > { %p425_p11 = por %p424_p3, %p423_p1 }
  0xcc   : > { %p421_p0 = pneg %p420_p9 }
  0xcd   : > { %p427_p13 = por %p426_p6, %p425_p11 }
  0xcf   : > { %p428_p7 = pnand %p427_p13, %p421_p0 }
  0xd1   : > { %431 = shalt.err (!%p428_p7)
}
  0xd2   : > { %327 = dma.vmem_to_hbm [thread:$0]  (%p672_p12), %s619_s7, 256, %s617_s17, %s212_s13  }
  0xd3 PF: > { %s238_s4 = sand.u32 1, %s458_s9   ;;  %p673_p10 = scmp.ne.s32.totalorder %s668_s22, 0 }
  0xd4   : > { %p674_p2 = scmp.ge.s32.totalorder %s470_s12, 2  ;;  %s239_s5 = scalar_lea.sflag [#allocation4], %s238_s4 }
  0xd6   : > { %p334_p4 = pnand %p674_p2, %p673_p10 }
  0xd8   : > { %453 = dma.done.wait (!%p334_p4), %s239_s5, 256  }
  0xd9   : > { %455 = vsyncadd (!%p334_p4), %s239_s5, 4294967040  ;;  %p15_p5 = scmp.ge.s32.totalorder %s516_s15, 4   ;;  %s675_s9 = smov %s462_s10 }
  0xda   : > { %s676_s10 = smov %s466_s11  ;;  %s677_s11 = smov %s528_s18 }
  0xdb   : > { %s678_s12 = smov %s516_s15  ;;  %17 = sbr.rel (!%p15_p5) target bundleno = 5 (0x5), region = 76 }
  0xe2   :  { %244 = vsyncpa [#allocation3], 1 }
  0xe3   :  { %246 = vsyncpa [#allocation3 + $0x1], 1 }
  0xe4   :  { %247 = vsyncpa [#allocation4], 1 }
  0xe5   :  { %249 = vsyncpa [#allocation4 + $0x1], 1 }

</bundles_post_ra>
